<compile_context>
chip_gen: v5e
topology: v5e:2x2
jax: 0.10.0
libtpu: 0.0.40
codegen_flags: <defaults>
</compile_context>

<pallas_src>
import jax
import jax.numpy as jnp
from jax.experimental import pallas as pl
from jax.experimental.pallas import tpu as pltpu


H1, H2, H3 = 128, 64, 32


def fusion_kernel(x_ref, w1_ref, b1_ref, w2_ref, b2_ref, w3_ref, b3_ref, o_ref):
    # Whole hot path (3 matmuls + bias + ReLU) fused; f32 accumulation on the MXU.
    # x is cast to the weight dtype *after* the HBM->VMEM load so a bf16 compute path does not
    # require an extra wrapper-side pass over x in HBM.
    x = x_ref[...].astype(w1_ref.dtype)
    h1 = jnp.dot(x, w1_ref[...], preferred_element_type=jnp.float32) + b1_ref[...]
    h1 = jnp.maximum(h1, 0.0).astype(w2_ref.dtype)
    h2 = jnp.dot(h1, w2_ref[...], preferred_element_type=jnp.float32) + b2_ref[...]
    h2 = jnp.maximum(h2, 0.0).astype(w3_ref.dtype)
    h3 = jnp.dot(h2, w3_ref[...], preferred_element_type=jnp.float32) + b3_ref[...]
    h3 = jnp.maximum(h3, 0.0)
    # Lane-dense store: when o_ref is (tm//4, 128) this packs 4 batch rows per 128-lane output
    # row (unmasked vst + dense writeback DMA).  When o_ref is (rows, 32) the reshape is a no-op.
    o_ref[...] = h3.reshape(o_ref.shape).astype(o_ref.dtype)


# ---------------------------------------------------------------------------
# One-time capability probe for the lane-dense output repack (sublane->lane reshape).
# ---------------------------------------------------------------------------
_PACK_OK = None


def _probe_kernel(x_ref, o_ref):
    o_ref[...] = x_ref[...].reshape(o_ref.shape)


def _pack_supported():
    global _PACK_OK
    if _PACK_OK is None:
        try:
            x = jnp.arange(32 * 32, dtype=jnp.float32).reshape(32, 32)
            out = pl.pallas_call(
                _probe_kernel,
                out_shape=jax.ShapeDtypeStruct((8, 128), jnp.float32),
            )(x)
            _PACK_OK = bool(jnp.array_equal(out, x.reshape(8, 128)))
        except Exception:
            _PACK_OK = False   # fall back to masked (rows, 32) stores
    return _PACK_OK


# ---------------------------------------------------------------------------
# Tiling helpers.
# ---------------------------------------------------------------------------
def _round_up(n, m):
    return ((n + m - 1) // m) * m


def _padded_vmem_bytes(shape, dtype):
    # VMEM pads the last two dims to (8, 128) tiles.
    r, c = shape[-2], shape[-1]
    return _round_up(r, 8) * _round_up(c, 128) * jnp.dtype(dtype).itemsize


def _choose_tm(batch, d, in_itemsize, out_itemsize):
    """Pick the batch row tile.

    Target 512 rows (multiple of 128 and 256 -> fills the v5e 4x128^2 and v6e/v7x 2x256^2
    MXUs), capped (a) by a conservative VMEM budget for the double-buffered, lane-padded
    x/out tiles and (b) so batches >= ~1K rows get >= 4 grid steps for v7x's two TensorCores
    (never below 256 rows).  32-row alignment covers f32/bf16 sublane packing and the /4
    output repack.
    """
    budget = 8 * 1024 * 1024
    per_row = 2 * (_round_up(d, 128) * in_itemsize + 128 * out_itemsize)
    cap = max(32, budget // per_row)
    tm = min(512, int(cap))
    tm = min(tm, max(256, _round_up(pl.cdiv(batch, 4), 32)))
    return max(32, (tm // 32) * 32)


# ---------------------------------------------------------------------------
# pallas_call builder: streams `n_steps` row tiles of `tm` rows from the front of x.
# ---------------------------------------------------------------------------
def _mlp_call(x, w1, b1, w2, b2, w3, b3, *, tm, n_steps, pack, out_dtype):
    _, D = x.shape
    rows = tm * n_steps
    in_itemsize = x.dtype.itemsize
    out_itemsize = jnp.dtype(out_dtype).itemsize

    full = lambda shape: pl.BlockSpec(shape, lambda i: (0, 0))
    if pack:
        out_shape = jax.ShapeDtypeStruct((rows // 4, 4 * H3), out_dtype)
        out_spec = pl.BlockSpec((tm // 4, 4 * H3), lambda i: (i, 0))
        out_tile_bytes = 2 * (tm // 4) * 128 * out_itemsize
    else:
        out_shape = jax.ShapeDtypeStruct((rows, H3), out_dtype)
        out_spec = pl.BlockSpec((tm, H3), lambda i: (i, 0))
        out_tile_bytes = 2 * tm * 128 * out_itemsize   # (tm, 32) pads to 128 lanes in VMEM

    # Size the scoped-VMEM limit to actual use (+ headroom); v7x has only 64 MiB per TC.
    weight_vmem = sum(_padded_vmem_bytes(a.shape, a.dtype)
                      for a in (w1, b1, w2, b2, w3, b3))
    tile_bytes = 2 * tm * _round_up(D, 128) * in_itemsize + out_tile_bytes
    vmem_limit = int(min(max(tile_bytes + 2 * weight_vmem + (4 << 20), 8 << 20), 56 << 20))

    weight_hbm = sum(a.size * a.dtype.itemsize for a in (w1, b1, w2, b2, w3, b3))
    cost = pl.CostEstimate(
        flops=2 * rows * (D * H1 + H1 * H2 + H2 * H3),
        transcendentals=0,
        bytes_accessed=rows * D * in_itemsize + rows * H3 * out_itemsize + weight_hbm,
    )

    out = pl.pallas_call(
        fusion_kernel,
        out_shape=out_shape,
        grid_spec=pltpu.PrefetchScalarGridSpec(
            num_scalar_prefetch=0,
            grid=(n_steps,),
            in_specs=[
                pl.BlockSpec((tm, D), lambda i: (i, 0)),   # x: streamed over the leading tiles
                full((D, H1)), full((1, H1)),              # weights/biases: constant block index
                full((H1, H2)), full((1, H2)),             # -> DMA'd once, VMEM-resident
                full((H2, H3)), full((1, H3)),
            ],
            out_specs=out_spec,
        ),
        compiler_params=pltpu.CompilerParams(
            dimension_semantics=("parallel",),   # batch tiles shard across v7x's 2 TCs
            vmem_limit_bytes=vmem_limit,
        ),
        cost_estimate=cost,
    )(x, w1, b1, w2, b2, w3, b3)

    if pack:
        # (rows//4, 128) -> (rows, 32): contiguous row-major reinterpretation, free in XLA.
        out = out.reshape(rows, H3)
    return out


def fusion_layer(x, w1, b1, w2, b2, w3, b3, *, tm=None, compute_dtype=None,
                 out_dtype=None, pack_output=True):
    """Fused input_size -> 128 -> 64 -> 32 MLP with ReLU after every layer.

    x: (batch, input_size).  Weights are (in_features, out_features) (transposed vs. PyTorch);
    biases are (1, out_features).  `compute_dtype` (e.g. jnp.bfloat16) casts only the tiny
    weights in the wrapper; x is cast inside the kernel after the HBM load.  For the full bf16
    HBM win, pass x already in bf16 from its producer.  `out_dtype` defaults to x.dtype.
    """
    B, D = x.shape
    out_dtype = jnp.dtype(x.dtype if out_dtype is None else out_dtype)

    if compute_dtype is not None:
        cd = jnp.dtype(compute_dtype)
        w1, w2, w3 = w1.astype(cd), w2.astype(cd), w3.astype(cd)
        # Biases stay f32 and are added to the f32 MXU accumulator inside the kernel.
        # x is intentionally NOT cast here (that would add a full HBM read+write pass over x).

    in_itemsize = x.dtype.itemsize
    out_itemsize = out_dtype.itemsize
    row_align = 8 if in_itemsize >= 4 else (16 if in_itemsize == 2 else 32)

    if tm is None:
        tm = _choose_tm(B, D, in_itemsize, out_itemsize)
    assert tm % row_align == 0, f"row tile must be a multiple of {row_align} for {x.dtype}"

    n_full = B // tm
    b_main = n_full * tm
    pack = pack_output and n_full > 0 and tm % 32 == 0 and _pack_supported()

    pieces = []
    if n_full > 0:
        # Main call reads row tiles straight out of the unpadded x; the grid never touches
        # the ragged tail, so no padding / full-activation copy is needed.
        pieces.append(_mlp_call(x, w1, b1, w2, b2, w3, b3,
                                tm=tm, n_steps=n_full, pack=pack, out_dtype=out_dtype))
    if b_main < B:
        # Ragged tail (< tm rows): tiny second call with full-array blocks on just those rows.
        x_tail = x[b_main:]
        pieces.append(_mlp_call(x_tail, w1, b1, w2, b2, w3, b3,
                                tm=B - b_main, n_steps=1, pack=False, out_dtype=out_dtype))
    # Only the small (batch, 32) outputs are concatenated in the ragged case.
    return pieces[0] if len(pieces) == 1 else jnp.concatenate(pieces, axis=0)


# ---------------------------------------------------------------------------
# Reference + init helpers.
# ---------------------------------------------------------------------------
def init_linear(key, fan_in, fan_out, dtype=jnp.float32):
    # Deterministic init mimicking nn.Linear default: U(-1/sqrt(fan_in), 1/sqrt(fan_in)).
    kw, kb = jax.random.split(key)
    bound = 1.0 / jnp.sqrt(float(fan_in))
    w = jax.random.uniform(kw, (fan_in, fan_out), dtype, -bound, bound)
    b = jax.random.uniform(kb, (1, fan_out), dtype, -bound, bound)
    return w, b


def _reference(x, w1, b1, w2, b2, w3, b3):
    relu = lambda t: jnp.maximum(t, 0.0)
    return relu(relu(relu(x @ w1 + b1) @ w2 + b2) @ w3 + b3)


if __name__ == "__main__":
    key = jax.random.PRNGKey(0)
    k_x1, k_x2, k_x3, k1, k2, k3 = jax.random.split(key, 6)

    input_size = 32
    w1, b1 = init_linear(k1, input_size, H1)
    w2, b2 = init_linear(k2, H1, H2)
    w3, b3 = init_linear(k3, H2, H3)

    # 1) Tiny batch (< one row tile): handled entirely by the single full-block call.
    x1 = jax.random.normal(k_x1, (8, input_size), jnp.float32)
    out1 = jax.block_until_ready(fusion_layer(x1, w1, b1, w2, b2, w3, b3))
    ref1 = _reference(x1, w1, b1, w2, b2, w3, b3)
    assert out1.shape == (8, H3) and out1.dtype == jnp.float32
    assert jnp.allclose(out1, ref1, atol=1e-5, rtol=1e-5)

    # 2) Ragged batch with an explicit tile: 3 lane-dense main steps (192 rows) + 8-row tail,
    #    with no padding / full-activation copies.
    x2 = jax.random.normal(k_x2, (200, input_size), jnp.float32)
    out2 = jax.block_until_ready(fusion_layer(x2, w1, b1, w2, b2, w3, b3, tm=64))
    ref2 = _reference(x2, w1, b1, w2, b2, w3, b3)
    assert out2.shape == (200, H3)
    assert jnp.allclose(out2, ref2, atol=1e-5, rtol=1e-5)

    # 3) Default tile choice on a divisible batch: multi-step "parallel" grid, main call only.
    x3 = jax.random.normal(k_x3, (512, input_size), jnp.float32)
    out3 = jax.block_until_ready(fusion_layer(x3, w1, b1, w2, b2, w3, b3))
    ref3 = _reference(x3, w1, b1, w2, b2, w3, b3)
    assert out3.shape == (512, H3)
    assert jnp.allclose(out3, ref3, atol=1e-5, rtol=1e-5)

    # 4) bf16 weights, x kept f32 in HBM and cast inside the kernel (no wrapper-side x cast);
    #    f32 MXU accumulation, f32 output, loose tolerance vs. the f32 reference.
    out4 = jax.block_until_ready(
        fusion_layer(x2, w1, b1, w2, b2, w3, b3, tm=64, compute_dtype=jnp.bfloat16))
    assert out4.dtype == jnp.float32
    assert jnp.allclose(out4, ref2, atol=5e-2, rtol=5e-2)

    print("KERNEL_OK")
</pallas_src>

<mosaic_0001>
module attributes {stable_mosaic.version = 11 : i64} {
  func.func @fusion_kernel(%arg0: i32, %arg1: memref<8x32xf32, #tpu.memory_space<vmem>>, %arg2: memref<32x128xf32, #tpu.memory_space<vmem>>, %arg3: memref<1x128xf32, #tpu.memory_space<vmem>>, %arg4: memref<128x64xf32, #tpu.memory_space<vmem>>, %arg5: memref<1x64xf32, #tpu.memory_space<vmem>>, %arg6: memref<64x32xf32, #tpu.memory_space<vmem>>, %arg7: memref<1x32xf32, #tpu.memory_space<vmem>>, %arg8: memref<8x32xf32, #tpu.memory_space<vmem>>) attributes {dimension_semantics = [#tpu.dimension_semantics<parallel>], iteration_bounds = array<i64: 1>, scalar_prefetch = 0 : i64, scratch_operands = 0 : i64, tpu.core_type = #tpu.core_type<tc>, window_params = [{transform_indices = @transform_0, window_bounds = array<i64: 8, 32>}, {pipeline_mode = #tpu.pipeline_mode<synchronous>, transform_indices = @transform_1, window_bounds = array<i64: 32, 128>}, {pipeline_mode = #tpu.pipeline_mode<synchronous>, transform_indices = @transform_2, window_bounds = array<i64: 1, 128>}, {pipeline_mode = #tpu.pipeline_mode<synchronous>, transform_indices = @transform_3, window_bounds = array<i64: 128, 64>}, {pipeline_mode = #tpu.pipeline_mode<synchronous>, transform_indices = @transform_4, window_bounds = array<i64: 1, 64>}, {pipeline_mode = #tpu.pipeline_mode<synchronous>, transform_indices = @transform_5, window_bounds = array<i64: 64, 32>}, {pipeline_mode = #tpu.pipeline_mode<synchronous>, transform_indices = @transform_6, window_bounds = array<i64: 1, 32>}, {transform_indices = @transform_7, window_bounds = array<i64: 8, 32>}]} {
    %c0 = arith.constant 0 : index
    %c0_0 = arith.constant 0 : index
    %0 = vector.load %arg1[%c0, %c0_0] : memref<8x32xf32, #tpu.memory_space<vmem>>, vector<8x32xf32>
    %c0_1 = arith.constant 0 : index
    %c0_2 = arith.constant 0 : index
    %1 = vector.load %arg2[%c0_1, %c0_2] : memref<32x128xf32, #tpu.memory_space<vmem>>, vector<32x128xf32>
    %cst = arith.constant dense<0.000000e+00> : vector<8x128xf32>
    %2 = tpu.matmul %0, %1, %cst {dimension_numbers = #tpu.dot_dimension_numbers<[1], [0], [0], [1], [0, 0, 1, 1], [], []>} : vector<8x32xf32>, vector<32x128xf32>, vector<8x128xf32> -> vector<8x128xf32>
    %c0_3 = arith.constant 0 : index
    %c0_4 = arith.constant 0 : index
    %3 = vector.load %arg3[%c0_3, %c0_4] : memref<1x128xf32, #tpu.memory_space<vmem>>, vector<1x128xf32>
    %4 = vector.broadcast %3 : vector<1x128xf32> to vector<8x128xf32>
    %5 = arith.addf %2, %4 : vector<8x128xf32>
    %cst_5 = arith.constant 0.000000e+00 : f32
    %6 = vector.broadcast %cst_5 : f32 to vector<8x128xf32>
    %7 = arith.maximumf %5, %6 : vector<8x128xf32>
    %c0_6 = arith.constant 0 : index
    %c0_7 = arith.constant 0 : index
    %8 = vector.load %arg4[%c0_6, %c0_7] : memref<128x64xf32, #tpu.memory_space<vmem>>, vector<128x64xf32>
    %cst_8 = arith.constant dense<0.000000e+00> : vector<8x64xf32>
    %9 = tpu.matmul %7, %8, %cst_8 {dimension_numbers = #tpu.dot_dimension_numbers<[1], [0], [0], [1], [0, 0, 1, 1], [], []>} : vector<8x128xf32>, vector<128x64xf32>, vector<8x64xf32> -> vector<8x64xf32>
    %c0_9 = arith.constant 0 : index
    %c0_10 = arith.constant 0 : index
    %10 = vector.load %arg5[%c0_9, %c0_10] : memref<1x64xf32, #tpu.memory_space<vmem>>, vector<1x64xf32>
    %11 = vector.broadcast %10 : vector<1x64xf32> to vector<8x64xf32>
    %12 = arith.addf %9, %11 : vector<8x64xf32>
    %cst_11 = arith.constant 0.000000e+00 : f32
    %13 = vector.broadcast %cst_11 : f32 to vector<8x64xf32>
    %14 = arith.maximumf %12, %13 : vector<8x64xf32>
    %c0_12 = arith.constant 0 : index
    %c0_13 = arith.constant 0 : index
    %15 = vector.load %arg6[%c0_12, %c0_13] : memref<64x32xf32, #tpu.memory_space<vmem>>, vector<64x32xf32>
    %cst_14 = arith.constant dense<0.000000e+00> : vector<8x32xf32>
    %16 = tpu.matmul %14, %15, %cst_14 {dimension_numbers = #tpu.dot_dimension_numbers<[1], [0], [0], [1], [0, 0, 1, 1], [], []>} : vector<8x64xf32>, vector<64x32xf32>, vector<8x32xf32> -> vector<8x32xf32>
    %c0_15 = arith.constant 0 : index
    %c0_16 = arith.constant 0 : index
    %17 = vector.load %arg7[%c0_15, %c0_16] : memref<1x32xf32, #tpu.memory_space<vmem>>, vector<1x32xf32>
    %18 = vector.broadcast %17 : vector<1x32xf32> to vector<8x32xf32>
    %19 = arith.addf %16, %18 : vector<8x32xf32>
    %cst_17 = arith.constant 0.000000e+00 : f32
    %20 = vector.broadcast %cst_17 : f32 to vector<8x32xf32>
    %21 = arith.maximumf %19, %20 : vector<8x32xf32>
    %c0_18 = arith.constant 0 : index
    %c0_19 = arith.constant 0 : index
    %22 = vector.load %arg8[%c0_18, %c0_19] : memref<8x32xf32, #tpu.memory_space<vmem>>, vector<8x32xf32>
    tpu.vector_store %arg8[%c0_18, %c0_19], %21 {strides = array<i32>} : memref<8x32xf32, #tpu.memory_space<vmem>>, vector<8x32xf32>,
    return
  }
  func.func @transform_0(%arg0: i32) -> (i32, i32) {
    %c0_i32 = arith.constant 0 : i32
    %c0_i32_0 = arith.constant 0 : i32
    return %arg0, %c0_i32 : i32, i32
  }
  func.func @transform_1(%arg0: i32) -> (i32, i32) {
    %c0_i32 = arith.constant 0 : i32
    %c0_i32_0 = arith.constant 0 : i32
    %c0_i32_1 = arith.constant 0 : i32
    return %c0_i32, %c0_i32_0 : i32, i32
  }
  func.func @transform_2(%arg0: i32) -> (i32, i32) {
    %c0_i32 = arith.constant 0 : i32
    %c0_i32_0 = arith.constant 0 : i32
    %c0_i32_1 = arith.constant 0 : i32
    return %c0_i32, %c0_i32_0 : i32, i32
  }
  func.func @transform_3(%arg0: i32) -> (i32, i32) {
    %c0_i32 = arith.constant 0 : i32
    %c0_i32_0 = arith.constant 0 : i32
    %c0_i32_1 = arith.constant 0 : i32
    return %c0_i32, %c0_i32_0 : i32, i32
  }
  func.func @transform_4(%arg0: i32) -> (i32, i32) {
    %c0_i32 = arith.constant 0 : i32
    %c0_i32_0 = arith.constant 0 : i32
    %c0_i32_1 = arith.constant 0 : i32
    return %c0_i32, %c0_i32_0 : i32, i32
  }
  func.func @transform_5(%arg0: i32) -> (i32, i32) {
    %c0_i32 = arith.constant 0 : i32
    %c0_i32_0 = arith.constant 0 : i32
    %c0_i32_1 = arith.constant 0 : i32
    return %c0_i32, %c0_i32_0 : i32, i32
  }
  func.func @transform_6(%arg0: i32) -> (i32, i32) {
    %c0_i32 = arith.constant 0 : i32
    %c0_i32_0 = arith.constant 0 : i32
    %c0_i32_1 = arith.constant 0 : i32
    return %c0_i32, %c0_i32_0 : i32, i32
  }
  func.func @transform_7(%arg0: i32) -> (i32, i32) {
    %c0_i32 = arith.constant 0 : i32
    %c0_i32_0 = arith.constant 0 : i32
    return %arg0, %c0_i32 : i32, i32
  }
}

</mosaic_0001>

<bundles_post_ra>
// kernel: tpu_custom_call.1
= control target key start
LH: loop header
LB: loop body
LE: loop exit
PB: predicated region body
PF: predicated region fallthrough
CT: control target
= control target key end

     0   :  { %vm36_vm0 = vcmask 261120   ;;  %s330_s0 = inlined_call_operand.vmem [shape: f32[8,32], index: 0, kind: input, shape index: {}]   ;;  %s331_s1 = inlined_call_operand.vmem [shape: f32[32,128], index: 1, kind: input, shape index: {}]   ;;  %s332_s2 = inlined_call_operand.vmem [shape: f32[1,128], index: 2, kind: input, shape index: {}]   ;;  %s333_s3 = inlined_call_operand.vmem [shape: f32[128,64], index: 3, kind: input, shape index: {}]   ;;  %s334_s4 = inlined_call_operand.vmem [shape: f32[1,64], index: 4, kind: input, shape index: {}]   ;;  %s335_s5 = inlined_call_operand.vmem [shape: f32[64,32], index: 5, kind: input, shape index: {}]   ;;  %s336_s6 = inlined_call_operand.vmem [shape: f32[1,32], index: 6, kind: input, shape index: {}]   ;;  %s337_s7 = inlined_call_operand.hbm [shape: f32[8,32], index: 7, kind: output, shape index: {}]  }
   0x1   :  { %v31_v0 = vld [vmem:[%s331_s1 + $0x18] sm:$0xff]  ;;  %v30_v1 = vld [vmem:[%s331_s1 + $0x10] sm:$0xff]  ;;  %v29_v3 = vld [vmem:[%s331_s1 + $0x8] sm:$0xff] }
   0x2   :  { %52 = vmatpush.msra.mxu0 %v31_v0  ;;  %v76_v2 = vld [vmem:[%s333_s3 + $0x78] sm:$0xff]  ;;  %v75_v4 = vld [vmem:[%s333_s3 + $0x70] sm:$0xff]  ;;  %v74_v5 = vld [vmem:[%s333_s3 + $0x68] sm:$0xff] }
   0x3   :  { %81 = vmatpush.msra.mxu1 %v76_v2  ;;  %v28_v6 = vld [vmem:[%s331_s1] sm:$0xff]  ;;  %v72_v9 = vld [vmem:[%s333_s3 + $0x58] sm:$0xff] }
   0x4   :  { %53 = vmatpush.msra.mxu0 %v30_v1  ;;  %v27_v7 = vld [vmem:[%s330_s0] sm:$0xff] }
   0x5   :  { %82 = vmatpush.msra.mxu1 %v75_v4  ;;  %v73_v8 = vld [vmem:[%s333_s3 + $0x60] sm:$0xff] }
   0x6   :  { %54 = vmatpush.msra.mxu0 %v29_v3 }
   0x7   :  { %83 = vmatpush.msra.mxu1 %v74_v5 }
   0x8   :  { %55 = vmatpush.msra.mxu0 %v28_v6 }
   0x9   :  { %12 = vsyncpa [#allocation3], 0  ;;  %156 = vmatmul.msk.f32.vlgmr.msra.gmra.mxu0 %vm36_vm0, %v27_v7  ;;  %84 = vmatpush.msra.mxu1 %v73_v8  ;;  %v71_v10 = vld [vmem:[%s333_s3 + $0x50] sm:$0xff]  ;;  %v70_v11 = vld [vmem:[%s333_s3 + $0x48] sm:$0xff]  ;;  %vm114_vm1 = vcmask 523264   ;;  %s188_s13 = smov [#allocation2]  }
   0xa   :  { %v69_v12 = vld [vmem:[%s333_s3 + $0x40] sm:$0xff]  ;;  %v68_v13 = vld [vmem:[%s333_s3 + $0x38] sm:$0xff]  ;;  %v67_v14 = vld [vmem:[%s333_s3 + $0x30] sm:$0xff]  ;;  %s145_s14 = sshll.u32 %s188_s13, 4  ;;  %s146_s14 = int_to_ptr.vmem [resolvable:$true] %s145_s14 }
   0xb   :  { %85 = vmatpush.msra.mxu1 %v72_v9  ;;  %v66_v15 = vld [vmem:[%s333_s3 + $0x28] sm:$0xff]  ;;  %v65_v16 = vld [vmem:[%s333_s3 + $0x20] sm:$0xff]  ;;  %v64_v17 = vld [vmem:[%s333_s3 + $0x18] sm:$0xff] }
   0xc   :  { %v63_v18 = vld [vmem:[%s333_s3 + $0x10] sm:$0xff]  ;;  %v62_v19 = vld [vmem:[%s333_s3 + $0x8] sm:$0xff]  ;;  %v61_v20 = vld [vmem:[%s333_s3] sm:$0xff] }
   0xd   :  { %86 = vmatpush.msra.mxu1 %v71_v10  ;;  %v109_v21 = vld [vmem:[%s335_s5 + $0x38] sm:$0xff]  ;;  %v108_v22 = vld [vmem:[%s335_s5 + $0x30] sm:$0xff]  ;;  %v107_v23 = vld [vmem:[%s335_s5 + $0x28] sm:$0xff] }
   0xe   :  { %126 = vmatpush.msra.mxu2 %v109_v21  ;;  %v106_v24 = vld [vmem:[%s335_s5 + $0x20] sm:$0xff]  ;;  %v105_v25 = vld [vmem:[%s335_s5 + $0x18] sm:$0xff]  ;;  %v104_v30 = vld [vmem:[%s335_s5 + $0x10] sm:$0xff] }
   0xf   :  { %87 = vmatpush.msra.mxu1 %v70_v11  ;;  %v159_v26 = vld [vmem:[%s332_s2] ss:$0 sm:$0xff]  ;;  %v103_v31 = vld [vmem:[%s335_s5 + $0x8] sm:$0xff] }
  0x10   :  { %127 = vmatpush.msra.mxu2 %v108_v22  ;;  %v102_v32 = vld [vmem:[%s335_s5] sm:$0xff]  ;;  %s147_s5 = sshll.u32 %s337_s7, 4  ;;  %s148_s5 = int_to_ptr.hbm [resolvable:$true] %s147_s5 }
  0x11   :  { %88 = vmatpush.msra.mxu1 %v69_v12  ;;  %v160_v33 = vld [vmem:[%s334_s4] ss:$0 sm:$0xff] }
  0x12   :  { %128 = vmatpush.msra.mxu2 %v107_v23  ;;  %v161_v37 = vld [vmem:[%s336_s6] ss:$0 sm:$0xff] }
  0x13   :  { %89 = vmatpush.msra.mxu1 %v68_v13 }
  0x14   :  { %129 = vmatpush.msra.mxu2 %v106_v24 }
  0x15   :  { %90 = vmatpush.msra.mxu1 %v67_v14 }
  0x16   :  { %130 = vmatpush.msra.mxu2 %v105_v25 }
  0x17   :  { %91 = vmatpush.msra.mxu1 %v66_v15 }
  0x18   :  { %131 = vmatpush.msra.mxu2 %v104_v30 }
  0x19   :  { %92 = vmatpush.msra.mxu1 %v65_v16 }
  0x1a   :  { %132 = vmatpush.msra.mxu2 %v103_v31 }
  0x1b   :  { %93 = vmatpush.msra.mxu1 %v64_v17 }
  0x1c   :  { %133 = vmatpush.msra.mxu2 %v102_v32 }
  0x1d   :  { %94 = vmatpush.msra.mxu1 %v63_v18 }
  0x1f   :  { %95 = vmatpush.msra.mxu1 %v62_v19 }
  0x21   :  { %96 = vmatpush.msra.mxu1 %v61_v20 }
  0x86   :  { %v57_v27 = vpop.f32.mrf.mxu0 }
  0x87   :  { %v58_v28 = vadd.f32 %v159_v26, %v57_v27 }
  0x89   :  { %v60_v29 = vmax.f32 %v58_v28, 0.0 }
  0x8b   :  { %97 = vmatmul.f32.vlgmr.msra.gmra.mxu1 %v60_v29 }
 0x108   :  { %v98_v34 = vpop.f32.mrf.mxu1 }
 0x109   :  { %v99_v35 = vadd.f32 %v160_v33, %v98_v34 }
 0x10b   :  { %v101_v36 = vmax.f32 %v99_v35, 0.0 }
 0x10d   :  { %157 = vmatmul.msk.f32.vlgmr.msra.gmra.mxu2 %vm114_vm1, %v101_v36 }
 0x190   :  { %v135_v38 = vpop.f32.mrf.mxu2 }
 0x191   :  { %v136_v39 = vadd.f32 %v161_v37, %v135_v38 }
 0x193   :  { %v138_v40 = vmax.f32 %v136_v39, 0.0 }
 0x195   :  { %139 = vst.msk [vmem:[#allocation2] sm:$0xff] %vm36_vm0, %v138_v40 }
 0x196   :  { %150 = dma.vmem_to_hbm [thread:$0]  %s146_s14, 128, %s148_s5, [#allocation3]  }
 0x197   :  { %186 = dma.done.wait [#allocation3], 128  }
 0x198   :  { %187 = vsyncadd [#allocation3], 4294967168 }
 0x199   :  { %155 = vsyncpa [#allocation3], 1 }

</bundles_post_ra>
